<compile_context>
chip_gen: v7x
topology: tpu7x:2x2x1
jax: 0.10.0
libtpu: 0.0.40
codegen_flags: <defaults>
</compile_context>

<pallas_src>
import jax
import jax.numpy as jnp
from jax.experimental import pallas as pl
from jax.experimental.pallas import tpu as pltpu

_VMEM_LIMIT = 48 * 1024 * 1024   # under v7x's 64 MiB physical VMEM, safe on v5e/v6e
_LANE = 128
_SUBLANE = 8
_NORM_EPS = 1e-12                # guards norm==0 rows (all-zero after ReLU)


# ----------------------------------------------------------------------------
# Small helpers
# ----------------------------------------------------------------------------
def _round_up(x, m):
    return ((x + m - 1) // m) * m


def _pad2(x, rows, cols):
    r, c = x.shape
    if r == rows and c == cols:
        return x
    return jnp.pad(x, ((0, rows - r), (0, cols - c)))


def _bytes(*arrs):
    return int(sum(int(a.size) * a.dtype.itemsize for a in arrs))


def _cparams(sem):
    return pltpu.CompilerParams(dimension_semantics=sem,
                                vmem_limit_bytes=_VMEM_LIMIT)


# ----------------------------------------------------------------------------
# Kernels
# ----------------------------------------------------------------------------
def _q_relu_kernel(x_ref, wq_t_ref, bq_ref, o_ref):
    # h_src = ReLU(feat_src @ Wq.T + bq)  -- bf16 MXU matmul, f32 accumulate.
    h = jnp.dot(x_ref[...], wq_t_ref[...], preferred_element_type=jnp.float32)
    o_ref[...] = jnp.maximum(h + bq_ref[...], 0.0).astype(o_ref.dtype)


def _agg_kernel(alpha_ref, hsrc_ref, featdst_ref,
                w1_t_ref, w2_t_ref, bw_ref, o_ref, acc_ref):
    # grid = (dst tiles [parallel], src/K tiles [arbitrary, reduction last])
    k = pl.program_id(1)

    @pl.when(k == 0)
    def _():
        acc_ref[...] = jnp.zeros_like(acc_ref)

    # h_n[d] += sum_s alpha[d, s] * h_src[s]   (f32 accumulator in VMEM scratch)
    acc_ref[...] += jnp.dot(alpha_ref[...], hsrc_ref[...],
                            preferred_element_type=jnp.float32)

    @pl.when(k == pl.num_programs(1) - 1)
    def _():
        # w(cat([feat_dst, h_n])) == feat_dst @ W1.T + h_n @ W2.T + b
        h = (jnp.dot(featdst_ref[...], w1_t_ref[...],
                     preferred_element_type=jnp.float32)
             + jnp.dot(acc_ref[...].astype(jnp.bfloat16), w2_t_ref[...],
                       preferred_element_type=jnp.float32)
             + bw_ref[...])
        h = jnp.maximum(h, 0.0)
        # L2 normalize along features; rsqrt runs on the EUP, eps avoids 0/0.
        r = jax.lax.rsqrt(jnp.sum(h * h, axis=-1, keepdims=True) + _NORM_EPS)
        o_ref[...] = (h * r).astype(o_ref.dtype)


def _mlp_kernel(x_ref, g1_t_ref, b1_ref, g2_t_ref, o_ref):
    h = jnp.dot(x_ref[...], g1_t_ref[...], preferred_element_type=jnp.float32)
    h = jnp.maximum(h + b1_ref[...], 0.0)
    o_ref[...] = jnp.dot(h.astype(jnp.bfloat16), g2_t_ref[...],
                         preferred_element_type=jnp.float32).astype(o_ref.dtype)


def _predict_kernel(u_ref, i_ref, o_ref):
    # predictions = user_embs @ item_embs.T, contracting the feature axis of
    # both operands directly (no in-kernel .T / XLU relayout).
    o_ref[...] = jax.lax.dot_general(
        u_ref[...], i_ref[...], (((1,), (1,)), ((), ())),
        preferred_element_type=jnp.float32)


# ----------------------------------------------------------------------------
# Wrappers
# ----------------------------------------------------------------------------
def pinsage_layer(feat, alpha, lp):
    """One PinSAGELayer forward.

    feat:  [n_src, in_dim] node features.  DGL block convention: the first
           n_dst rows of feat are the destination nodes (asserted below).
    alpha: [n_dst, n_src] dense edge-weight matrix (must be exactly zero for
           non-edges / padded rows+cols, otherwise they leak into h_n).
    """
    n_src, din = feat.shape
    n_dst = alpha.shape[0]
    assert alpha.shape[1] == n_src and n_dst <= n_src, "expects a DGL block"
    assert din == lp["din"]
    din_p, dout_p, dout = lp["din_p"], lp["dout_p"], lp["dout"]

    # Tile sizes: K / feature dims lane-dense (multiples of 128), row tiles x8.
    t_src = min(512, _round_up(n_src, _LANE))
    n_src_p = _round_up(n_src, t_src)
    t_dst = min(256, _round_up(n_dst, _SUBLANE))
    n_dst_p = _round_up(n_dst, t_dst)

    feat_src_p = _pad2(feat, n_src_p, din_p).astype(jnp.bfloat16)
    feat_dst_p = _pad2(feat[:n_dst], n_dst_p, din_p).astype(jnp.bfloat16)
    alpha_p = _pad2(alpha, n_dst_p, n_src_p).astype(jnp.bfloat16)

    # ---- stage 1: h_src = ReLU(q(feat_src)), computed once per layer --------
    hsrc = pl.pallas_call(
        _q_relu_kernel,
        grid=(n_src_p // t_src,),
        in_specs=[pl.BlockSpec((t_src, din_p), lambda i: (i, 0)),
                  pl.BlockSpec((din_p, din_p), lambda i: (0, 0)),
                  pl.BlockSpec((1, din_p), lambda i: (0, 0))],
        out_specs=pl.BlockSpec((t_src, din_p), lambda i: (i, 0)),
        out_shape=jax.ShapeDtypeStruct((n_src_p, din_p), jnp.bfloat16),
        compiler_params=_cparams(("parallel",)),
        cost_estimate=pl.CostEstimate(
            flops=2 * n_src_p * din_p * din_p,
            transcendentals=0,
            bytes_accessed=_bytes(feat_src_p, lp["wq_t"], lp["bq"])
                           + n_src_p * din_p * 2),
    )(feat_src_p, lp["wq_t"], lp["bq"])

    # ---- stage 2: weighted neighbour sum + w(cat) + ReLU + L2 norm ----------
    out = pl.pallas_call(
        _agg_kernel,
        grid=(n_dst_p // t_dst, n_src_p // t_src),
        in_specs=[
            pl.BlockSpec((t_dst, t_src), lambda i, k: (i, k)),    # alpha
            pl.BlockSpec((t_src, din_p), lambda i, k: (k, 0)),    # h_src
            pl.BlockSpec((t_dst, din_p), lambda i, k: (i, 0)),    # feat_dst
            pl.BlockSpec((din_p, dout_p), lambda i, k: (0, 0)),   # W1.T
            pl.BlockSpec((din_p, dout_p), lambda i, k: (0, 0)),   # W2.T
            pl.BlockSpec((1, dout_p), lambda i, k: (0, 0)),       # bw
        ],
        out_specs=pl.BlockSpec((t_dst, dout_p), lambda i, k: (i, 0)),
        out_shape=jax.ShapeDtypeStruct((n_dst_p, dout_p), jnp.bfloat16),
        scratch_shapes=[pltpu.VMEM((t_dst, din_p), jnp.float32)],
        compiler_params=_cparams(("parallel", "arbitrary")),
        cost_estimate=pl.CostEstimate(
            flops=2 * n_dst_p * n_src_p * din_p + 4 * n_dst_p * din_p * dout_p,
            transcendentals=n_dst_p,
            bytes_accessed=_bytes(alpha_p, hsrc, feat_dst_p, lp["w1_t"],
                                  lp["w2_t"], lp["bw"]) + n_dst_p * dout_p * 2),
    )(alpha_p, hsrc, feat_dst_p, lp["w1_t"], lp["w2_t"], lp["bw"])

    return out[:n_dst, :dout]


def pinsage_mlp(x, mp):
    """_mlp: g_2(ReLU(g_1(x))), tiled over rows."""
    n, d = x.shape
    assert d == mp["d"]
    d_p = mp["d_p"]
    t_m = min(256, _round_up(n, _SUBLANE))
    n_p = _round_up(n, t_m)
    x_p = _pad2(x, n_p, d_p).astype(jnp.bfloat16)

    out = pl.pallas_call(
        _mlp_kernel,
        grid=(n_p // t_m,),
        in_specs=[pl.BlockSpec((t_m, d_p), lambda i: (i, 0)),
                  pl.BlockSpec((d_p, d_p), lambda i: (0, 0)),
                  pl.BlockSpec((1, d_p), lambda i: (0, 0)),
                  pl.BlockSpec((d_p, d_p), lambda i: (0, 0))],
        out_specs=pl.BlockSpec((t_m, d_p), lambda i: (i, 0)),
        out_shape=jax.ShapeDtypeStruct((n_p, d_p), jnp.float32),
        compiler_params=_cparams(("parallel",)),
        cost_estimate=pl.CostEstimate(
            flops=4 * n_p * d_p * d_p,
            transcendentals=0,
            bytes_accessed=_bytes(x_p, mp["g1_t"], mp["b1"], mp["g2_t"])
                           + n_p * d_p * 4),
    )(x_p, mp["g1_t"], mp["b1"], mp["g2_t"])
    return out[:n, :d]


def pinsage_forward_bpr(embeddings, users, items):
    """PinSAGE.forward with bpr=True: embeddings[users] @ embeddings[items].T."""
    u = embeddings[users].astype(jnp.bfloat16)    # gathers: plain-JAX glue
    it = embeddings[items].astype(jnp.bfloat16)
    n_u, d = u.shape
    n_i = it.shape[0]
    d_p = _round_up(d, _LANE)
    t_u = min(256, _round_up(n_u, _SUBLANE))
    t_i = min(256, _round_up(n_i, _LANE))        # lane-dense output tiles
    n_u_p = _round_up(n_u, t_u)
    n_i_p = _round_up(n_i, t_i)
    u_p = _pad2(u, n_u_p, d_p)
    i_p = _pad2(it, n_i_p, d_p)

    out = pl.pallas_call(
        _predict_kernel,
        grid=(n_u_p // t_u, n_i_p // t_i),
        in_specs=[pl.BlockSpec((t_u, d_p), lambda i, j: (i, 0)),
                  pl.BlockSpec((t_i, d_p), lambda i, j: (j, 0))],
        out_specs=pl.BlockSpec((t_u, t_i), lambda i, j: (i, j)),
        out_shape=jax.ShapeDtypeStruct((n_u_p, n_i_p), jnp.float32),
        compiler_params=_cparams(("parallel", "parallel")),
        cost_estimate=pl.CostEstimate(
            flops=2 * n_u_p * n_i_p * d_p,
            transcendentals=0,
            bytes_accessed=_bytes(u_p, i_p) + n_u_p * n_i_p * 4),
    )(u_p, i_p)
    return out[:n_u, :n_i]


# ----------------------------------------------------------------------------
# Deterministic parameter init (mirrors __init__: xavier_uniform, gain=relu)
# and one-time TPU layout preparation (pad/transpose/cast to bf16).
# ----------------------------------------------------------------------------
def _xavier_uniform(key, shape, gain):
    fan_out, fan_in = shape
    bound = gain * (6.0 / (fan_in + fan_out)) ** 0.5
    return jax.random.uniform(key, shape, jnp.float32, -bound, bound)


def init_params(key, feature_dim, layer_dims):
    gain = 2.0 ** 0.5  # nn.init.calculate_gain('relu')
    params = {"layers": []}
    in_dim = feature_dim
    for out_dim in layer_dims:
        key, k1, k2 = jax.random.split(key, 3)
        params["layers"].append(dict(
            q_w=_xavier_uniform(k1, (in_dim, in_dim), gain),
            q_b=jnp.zeros((in_dim,), jnp.float32),
            w_w=_xavier_uniform(k2, (out_dim, 2 * in_dim), gain),
            w_b=jnp.zeros((out_dim,), jnp.float32),
        ))
        in_dim = out_dim
    out_dim = layer_dims[-1]
    key, k1, k2 = jax.random.split(key, 3)
    params["g1_w"] = _xavier_uniform(k1, (out_dim, out_dim), gain)
    params["g1_b"] = jnp.zeros((out_dim,), jnp.float32)
    params["g2_w"] = _xavier_uniform(k2, (out_dim, out_dim), gain)
    return params


def prepare_params(params):
    """Pad / transpose / cast weights to TPU layouts ONCE (not per call)."""
    prepared = {"layers": []}
    for lp in params["layers"]:
        din = lp["q_w"].shape[0]
        dout = lp["w_w"].shape[0]
        din_p = _round_up(din, _LANE)
        dout_p = _round_up(dout, _LANE)
        prepared["layers"].append(dict(
            din=din, dout=dout, din_p=din_p, dout_p=dout_p,
            wq_t=_pad2(lp["q_w"].T, din_p, din_p).astype(jnp.bfloat16),
            bq=_pad2(lp["q_b"].reshape(1, -1), 1, din_p).astype(jnp.float32),
            w1_t=_pad2(lp["w_w"][:, :din].T, din_p, dout_p).astype(jnp.bfloat16),
            w2_t=_pad2(lp["w_w"][:, din:].T, din_p, dout_p).astype(jnp.bfloat16),
            bw=_pad2(lp["w_b"].reshape(1, -1), 1, dout_p).astype(jnp.float32),
        ))
    d = params["g1_w"].shape[0]
    d_p = _round_up(d, _LANE)
    prepared["mlp"] = dict(
        d=d, d_p=d_p,
        g1_t=_pad2(params["g1_w"].T, d_p, d_p).astype(jnp.bfloat16),
        b1=_pad2(params["g1_b"].reshape(1, -1), 1, d_p).astype(jnp.float32),
        g2_t=_pad2(params["g2_w"].T, d_p, d_p).astype(jnp.bfloat16),
    )
    return prepared


# ----------------------------------------------------------------------------
# End-to-end: embedder (dropout=eval) -> layers -> mlp -> forward (bpr=True)
# ----------------------------------------------------------------------------
def run_pinsage(prepared, feats, alphas, users, items):
    x = feats  # TODO(synk): dropout with p>0 (training) not implemented; eval identity.
    for lp, alpha in zip(prepared["layers"], alphas):
        x = pinsage_layer(x, alpha, lp)
    embeddings = pinsage_mlp(x, prepared["mlp"])
    preds = pinsage_forward_bpr(embeddings, users, items)
    return embeddings, preds


if __name__ == "__main__":
    key = jax.random.PRNGKey(0)

    feature_dim = 32
    layer_dims = (64, 32)
    n_src0, n_dst0 = 32, 16   # block 0: 32 source nodes -> 16 dst nodes
    n_dst1 = 8                # block 1: 16 source nodes -> 8 dst nodes

    kp, kf, ka0, ka1 = jax.random.split(key, 4)
    params = init_params(kp, feature_dim, layer_dims)
    prepared = prepare_params(params)

    feats = jax.random.normal(kf, (n_src0, feature_dim), jnp.float32)
    # dense edge-weight ("alpha") matrices standing in for the DGL blocks
    alpha0 = jax.random.uniform(ka0, (n_dst0, n_src0), jnp.float32)
    alpha1 = jax.random.uniform(ka1, (n_dst1, n_dst0), jnp.float32)

    users = jnp.array([0, 1], jnp.int32)
    items = jnp.array([2, 3, 4, 5], jnp.int32)

    embeddings, preds = run_pinsage(prepared, feats, (alpha0, alpha1), users, items)
    jax.block_until_ready((embeddings, preds))

    assert embeddings.shape == (n_dst1, layer_dims[-1])
    assert preds.shape == (users.shape[0], items.shape[0])
    assert bool(jnp.all(jnp.isfinite(embeddings))) and bool(jnp.all(jnp.isfinite(preds)))
    print("KERNEL_OK")
</pallas_src>

<mosaic_0001>
module attributes {stable_mosaic.version = 11 : i64} {
  func.func @_q_relu_kernel(%arg0: i32, %arg1: memref<128x128xbf16, #tpu.memory_space<vmem>>, %arg2: memref<128x128xbf16, #tpu.memory_space<vmem>>, %arg3: memref<1x128xf32, #tpu.memory_space<vmem>>, %arg4: memref<128x128xbf16, #tpu.memory_space<vmem>>) attributes {dimension_semantics = [#tpu.dimension_semantics<parallel>], iteration_bounds = array<i64: 1>, scalar_prefetch = 0 : i64, scratch_operands = 0 : i64, tpu.core_type = #tpu.core_type<tc>, window_params = [{transform_indices = @transform_0, window_bounds = array<i64: 128, 128>}, {pipeline_mode = #tpu.pipeline_mode<synchronous>, transform_indices = @transform_1, window_bounds = array<i64: 128, 128>}, {pipeline_mode = #tpu.pipeline_mode<synchronous>, transform_indices = @transform_2, window_bounds = array<i64: 1, 128>}, {transform_indices = @transform_3, window_bounds = array<i64: 128, 128>}]} {
    %c0 = arith.constant 0 : index
    %c0_0 = arith.constant 0 : index
    %0 = vector.load %arg1[%c0, %c0_0] : memref<128x128xbf16, #tpu.memory_space<vmem>>, vector<128x128xbf16>
    %c0_1 = arith.constant 0 : index
    %c0_2 = arith.constant 0 : index
    %1 = vector.load %arg2[%c0_1, %c0_2] : memref<128x128xbf16, #tpu.memory_space<vmem>>, vector<128x128xbf16>
    %cst = arith.constant dense<0.000000e+00> : vector<128x128xf32>
    %2 = tpu.matmul %0, %1, %cst {dimension_numbers = #tpu.dot_dimension_numbers<[1], [0], [0], [1], [0, 0, 1, 1], [], []>} : vector<128x128xbf16>, vector<128x128xbf16>, vector<128x128xf32> -> vector<128x128xf32>
    %c0_3 = arith.constant 0 : index
    %c0_4 = arith.constant 0 : index
    %3 = vector.load %arg3[%c0_3, %c0_4] : memref<1x128xf32, #tpu.memory_space<vmem>>, vector<1x128xf32>
    %4 = vector.broadcast %3 : vector<1x128xf32> to vector<128x128xf32>
    %5 = arith.addf %2, %4 : vector<128x128xf32>
    %cst_5 = arith.constant 0.000000e+00 : f32
    %6 = vector.broadcast %cst_5 : f32 to vector<128x128xf32>
    %7 = arith.maximumf %5, %6 : vector<128x128xf32>
    %8 = arith.truncf %7 : vector<128x128xf32> to vector<128x128xbf16>
    %c0_6 = arith.constant 0 : index
    %c0_7 = arith.constant 0 : index
    %9 = vector.load %arg4[%c0_6, %c0_7] : memref<128x128xbf16, #tpu.memory_space<vmem>>, vector<128x128xbf16>
    tpu.vector_store %arg4[%c0_6, %c0_7], %8 {strides = array<i32>} : memref<128x128xbf16, #tpu.memory_space<vmem>>, vector<128x128xbf16>,
    return
  }
  func.func @transform_0(%arg0: i32) -> (i32, i32) {
    %c0_i32 = arith.constant 0 : i32
    %c0_i32_0 = arith.constant 0 : i32
    return %arg0, %c0_i32 : i32, i32
  }
  func.func @transform_1(%arg0: i32) -> (i32, i32) {
    %c0_i32 = arith.constant 0 : i32
    %c0_i32_0 = arith.constant 0 : i32
    %c0_i32_1 = arith.constant 0 : i32
    return %c0_i32, %c0_i32_0 : i32, i32
  }
  func.func @transform_2(%arg0: i32) -> (i32, i32) {
    %c0_i32 = arith.constant 0 : i32
    %c0_i32_0 = arith.constant 0 : i32
    %c0_i32_1 = arith.constant 0 : i32
    return %c0_i32, %c0_i32_0 : i32, i32
  }
  func.func @transform_3(%arg0: i32) -> (i32, i32) {
    %c0_i32 = arith.constant 0 : i32
    %c0_i32_0 = arith.constant 0 : i32
    return %arg0, %c0_i32 : i32, i32
  }
}

</mosaic_0001>

<bundles_post_ra>
// kernel: tpu_custom_call.1
= control target key start
LH: loop header
LB: loop body
LE: loop exit
PB: predicated region body
PF: predicated region fallthrough
CT: control target
= control target key end

     0   :  { %8 = vsyncpa [#allocation3], 0  ;;  %s716_s0 = inlined_call_operand.hbm [shape: bf16[128,128], index: 0, kind: input, shape index: {}]   ;;  %s717_s1 = inlined_call_operand.hbm [shape: bf16[128,128], index: 1, kind: input, shape index: {}]   ;;  %s718_s2 = inlined_call_operand.vmem [shape: f32[1,128], index: 2, kind: input, shape index: {}]   ;;  %s719_s3 = inlined_call_operand.hbm [shape: bf16[128,128], index: 3, kind: output, shape index: {}]  }
   0x1   :  { %9 = vsyncpa [#allocation6], 0 }
   0x2   :  { %10 = vsyncpa [#allocation4], 0  ;;  %s643_s12 = smov [#allocation2]   ;;  %s571_s16 = scalar_lea.hbm %s716_s0, 1024 }
   0x3   :  { %s16_s13 = sshll.u32 %s643_s12, 4  ;;  %p572_p0 = scmp.ne.s32.totalorder %s716_s0, %s571_s16  ;;  %s17_s13 = int_to_ptr.vmem [resolvable:$true] %s16_s13 }
   0x4   :  { %p575_p1 = scmp.lt.u32.totalorder %s571_s16, %s716_s0 }
   0x6   :  { %p577_p2 = pnand %p575_p1, %p572_p0 }
   0x8   :  { %580 = shalt.err (!%p577_p2)
}
   0x9   :  { %s581_s21 = scalar_lea.vmem %s17_s13, 1024  ;;  %p586_p4 = scmp.lt.s32.totalorder %s17_s13, %s17_s13 }
   0xa   :  { %p582_p3 = scmp.ne.s32.totalorder %s17_s13, %s581_s21  ;;  %p587_p5 = scmp.lt.s32.totalorder %s581_s21, %s581_s21 }
   0xc   :  { %p588_p6 = por %p587_p5, %p586_p4 }
   0xe   :  { %p589_p7 = pnand %p588_p6, %p582_p3 }
  0x10   :  { %592 = shalt.err (!%p589_p7)
}
  0x11   :  { %s644_s22 = smov 64   ;;  %s645_s23 = smov 4  }
  0x12   :  { %22 = dma.hbm_to_vmem [thread:$0]  %s716_s0, 1024, %s17_s13, [#allocation3], %s644_s22, %s644_s22, %s645_s23  }
  0x13   :  { %s646_s26 = smov [#allocation5]   ;;  %s593_s30 = scalar_lea.hbm %s717_s1, 1024 }
  0x14   :  { %s28_s27 = sshll.u32 %s646_s26, 4  ;;  %p594_p8 = scmp.ne.s32.totalorder %s717_s1, %s593_s30  ;;  %s29_s27 = int_to_ptr.vmem [resolvable:$true] %s28_s27 }
  0x15   :  { %p597_p9 = scmp.lt.u32.totalorder %s593_s30, %s717_s1 }
  0x17   :  { %p599_p10 = pnand %p597_p9, %p594_p8 }
  0x19   :  { %602 = shalt.err (!%p599_p10)
}
  0x1a   :  { %s603_s8 = scalar_lea.vmem %s29_s27, 1024  ;;  %p608_p12 = scmp.lt.s32.totalorder %s29_s27, %s29_s27 }
  0x1b   :  { %p604_p11 = scmp.ne.s32.totalorder %s29_s27, %s603_s8  ;;  %p609_p13 = scmp.lt.s32.totalorder %s603_s8, %s603_s8 }
  0x1d   :  { %p610_p0 = por %p609_p13, %p608_p12 }
  0x1f   :  { %p611_p1 = pnand %p610_p0, %p604_p11 }
  0x21   :  { %614 = shalt.err (!%p611_p1)
}
  0x22   :  { %34 = dma.hbm_to_vmem [thread:$0]  %s717_s1, 1024, %s29_s27, [#allocation6], %s644_s22, %s644_s22, %s645_s23  }
  0x23   :  { %637 = dma.done.wait [#allocation3], 1024  }
  0x24   :  { %638 = vsyncadd [#allocation3], 4294966272 }
  0x25   :  { %639 = dma.done.wait [#allocation6], 1024  }
  0x26   :  { %640 = vsyncadd [#allocation6], 4294966272  ;;  %v555_v0 = vld [vmem:[#allocation5] sm:$0xff]   ;;  %v556_v1 = vld [vmem:[#allocation5 + $0x8] sm:$0xff]  }
  0x27   :  { %502 = vmatprep.subr.bf16.mxu0 %v555_v0  ;;  %534 = vmatprep.subr.bf16.mxu1 %v555_v0  ;;  %v557_v2 = vld [vmem:[#allocation5 + $0x10] sm:$0xff]   ;;  %v558_v3 = vld [vmem:[#allocation5 + $0x18] sm:$0xff]   ;;  %v563_v4 = vld [vmem:[#allocation2] sm:$0xff]  }
  0x28   :  { %503 = vmatpush3.bf16.msra.mxu0 %v555_v0  ;;  %542 = vmatpush3.bf16.msra.mxu1 %v555_v0  ;;  %v564_v5 = vld [vmem:[#allocation2 + $0x20] sm:$0xff]   ;;  %v560_v7 = vld [vmem:[#allocation5 + $0x28] sm:$0xff]   ;;  %v561_v8 = vld [vmem:[#allocation5 + $0x30] sm:$0xff]  }
  0x29   :  { %504 = vmatprep.subr.bf16.mxu0 %v556_v1  ;;  %535 = vmatprep.subr.bf16.mxu1 %v556_v1  ;;  %v559_v6 = vld [vmem:[#allocation5 + $0x20] sm:$0xff]   ;;  %v562_v9 = vld [vmem:[#allocation5 + $0x38] sm:$0xff]   ;;  %v565_v10 = vld [vmem:[#allocation2 + $0x8] sm:$0xff]  }
  0x2a   :  { %518 = vmatprep.mubr.bf16.mxu0 %v563_v4  ;;  %526 = vmatprep.mubr.bf16.mxu1 %v564_v5  ;;  %v566_v11 = vld [vmem:[#allocation2 + $0x28] sm:$0xff]   ;;  %v567_v12 = vld [vmem:[#allocation2 + $0x10] sm:$0xff]   ;;  %v569_v14 = vld [vmem:[#allocation2 + $0x18] sm:$0xff]  }
  0x2b   :  { %v568_v13 = vld [vmem:[#allocation2 + $0x30] sm:$0xff]   ;;  %v570_v15 = vld [vmem:[#allocation2 + $0x38] sm:$0xff]   ;;  %v390_v16 = vld [vmem:[%s718_s2] ss:$0 sm:$0xff]  ;;  %s647_s2 = smov [#allocation7]  }
  0x2c   :  { %505 = vmatpush3.bf16.msra.mxu0 %v556_v1  ;;  %543 = vmatpush3.bf16.msra.mxu1 %v556_v1  ;;  %s377_s11 = sshll.u32 %s647_s2, 4  ;;  %s378_s11 = int_to_ptr.vmem [resolvable:$true] %s377_s11 }
  0x2d   :  { %506 = vmatprep.subr.bf16.mxu0 %v557_v2  ;;  %536 = vmatprep.subr.bf16.mxu1 %v557_v2  ;;  %s615_s12 = scalar_lea.vmem %s378_s11, 1024  ;;  %p620_p3 = scmp.lt.s32.totalorder %s378_s11, %s378_s11 }
  0x2e   :  { %p616_p2 = scmp.ne.s32.totalorder %s378_s11, %s615_s12  ;;  %p621_p4 = scmp.lt.s32.totalorder %s615_s12, %s615_s12 }
  0x30   :  { %507 = vmatpush3.bf16.msra.mxu0 %v557_v2  ;;  %544 = vmatpush3.bf16.msra.mxu1 %v557_v2  ;;  %p622_p5 = por %p621_p4, %p620_p3 }
  0x31   :  { %508 = vmatprep.subr.bf16.mxu0 %v558_v3  ;;  %537 = vmatprep.subr.bf16.mxu1 %v558_v3 }
  0x32   :  { %p623_p6 = pnand %p622_p5, %p616_p2 }
  0x34   :  { %509 = vmatpush3.bf16.msra.mxu0 %v558_v3  ;;  %545 = vmatpush3.bf16.msra.mxu1 %v558_v3 }
  0x35   :  { %510 = vmatprep.subr.bf16.mxu0 %v559_v6  ;;  %538 = vmatprep.subr.bf16.mxu1 %v559_v6 }
  0x38   :  { %511 = vmatpush3.bf16.msra.mxu0 %v559_v6  ;;  %546 = vmatpush3.bf16.msra.mxu1 %v559_v6 }
  0x39   :  { %512 = vmatprep.subr.bf16.mxu0 %v560_v7  ;;  %539 = vmatprep.subr.bf16.mxu1 %v560_v7 }
  0x3c   :  { %513 = vmatpush3.bf16.msra.mxu0 %v560_v7  ;;  %547 = vmatpush3.bf16.msra.mxu1 %v560_v7 }
  0x3d   :  { %514 = vmatprep.subr.bf16.mxu0 %v561_v8  ;;  %540 = vmatprep.subr.bf16.mxu1 %v561_v8 }
  0x40   :  { %515 = vmatpush3.bf16.msra.mxu0 %v561_v8  ;;  %548 = vmatpush3.bf16.msra.mxu1 %v561_v8 }
  0x41   :  { %516 = vmatprep.subr.bf16.mxu0 %v562_v9  ;;  %541 = vmatprep.subr.bf16.mxu1 %v562_v9 }
  0x44   :  { %517 = vmatpush3.bf16.msra.mxu0 %v562_v9  ;;  %549 = vmatpush3.bf16.msra.mxu1 %v562_v9 }
  0x47   :  { %519 = vmatmul.mubr.bf16.vlgmr.msra.gmra.mrb[0].mxu0 %v565_v10  ;;  %527 = vmatmul.mubr.bf16.vlgmr.msra.gmra.mrb[0].mxu1 %v566_v11 }
  0x48   :  { %522 = vmatprep.mubr.bf16.mxu0 %v567_v12  ;;  %530 = vmatprep.mubr.bf16.mxu1 %v568_v13 }
  0x4f   :  { %523 = vmatmul.mubr.bf16.gmra.mrb[4].mxu0 %v569_v14  ;;  %531 = vmatmul.mubr.bf16.gmra.mrb[4].mxu1 %v570_v15 }
 0x11a   :  { %v520_v17 = vpop.f32.mrb[0].mxu0  ;;  %v528_v18 = vpop.f32.mrb[0].mxu1 }
 0x11b   :  { %v222_v19 = vadd.f32 %v520_v17, %v390_v16  ;;  %v254_v20 = vadd.f32 %v528_v18, %v390_v16  ;;  %v213_v21 = vpop.f32.mrb[1].mxu0  ;;  %v245_v22 = vpop.f32.mrb[1].mxu1 }
 0x11c   :  { %v214_v23 = vadd.f32 %v390_v16, %v213_v21  ;;  %v246_v24 = vadd.f32 %v390_v16, %v245_v22  ;;  %v521_v25 = vpop.f32.mrb[2].mxu0  ;;  %v529_v26 = vpop.f32.mrb[2].mxu1 }
 0x11d   :  { %v225_v27 = vadd.f32 %v521_v25, %v390_v16  ;;  %v257_v28 = vadd.f32 %v529_v26, %v390_v16  ;;  %v216_v29 = vpop.f32.mrb[3].mxu0  ;;  %v248_v30 = vpop.f32.mrb[3].mxu1  ;;  %v278_v33 = vmax.f32 %v222_v19, 0.0  ;;  %v286_v34 = vmax.f32 %v254_v20, 0.0 }
 0x11e   :  { %v217_v31 = vadd.f32 %v390_v16, %v216_v29  ;;  %v249_v32 = vadd.f32 %v390_v16, %v248_v30  ;;  %v276_v37 = vmax.f32 %v214_v23, 0.0  ;;  %v284_v38 = vmax.f32 %v246_v24, 0.0 }
 0x11f   :  { %v279_v35 = vmax.f32 %v225_v27, 0.0  ;;  %v287_v36 = vmax.f32 %v257_v28, 0.0 }
 0x120   :  { %v277_v39 = vmax.f32 %v217_v31, 0.0  ;;  %v285_v40 = vmax.f32 %v249_v32, 0.0 }
 0x121   :  { %v447_v41 = vpack.c.bf16 %v279_v35, %v278_v33  ;;  %v467_v42 = vpack.c.bf16 %v287_v36, %v286_v34 }
 0x122   :  { %v442_v43 = vpack.c.bf16 %v277_v39, %v276_v37  ;;  %v462_v44 = vpack.c.bf16 %v285_v40, %v284_v38  ;;  %v524_v45 = vpop.f32.mrb[4].mxu0  ;;  %v532_v46 = vpop.f32.mrb[4].mxu1 }
 0x123   :  { %479 = vst [vmem:[#allocation7 + $0x8] sm:$0xff] %v447_v41   ;;  %483 = vst [vmem:[#allocation7 + $0x28] sm:$0xff] %v467_v42   ;;  %v238_v47 = vadd.f32 %v524_v45, %v390_v16  ;;  %v270_v48 = vadd.f32 %v532_v46, %v390_v16  ;;  %v229_v49 = vpop.f32.mrb[5].mxu0  ;;  %v261_v50 = vpop.f32.mrb[5].mxu1 }
 0x124   :  { %443 = vst [vmem:[#allocation7] sm:$0xff] %v442_v43   ;;  %482 = vst [vmem:[#allocation7 + $0x20] sm:$0xff] %v462_v44   ;;  %v230_v51 = vadd.f32 %v390_v16, %v229_v49  ;;  %v262_v52 = vadd.f32 %v390_v16, %v261_v50  ;;  %v525_v53 = vpop.f32.mrb[6].mxu0  ;;  %v533_v54 = vpop.f32.mrb[6].mxu1 }
 0x125   :  { %v241_v55 = vadd.f32 %v525_v53, %v390_v16  ;;  %v273_v56 = vadd.f32 %v533_v54, %v390_v16  ;;  %v232_v57 = vpop.f32.mrb[7].mxu0  ;;  %v264_v58 = vpop.f32.mrb[7].mxu1  ;;  %v282_v61 = vmax.f32 %v238_v47, 0.0  ;;  %v290_v62 = vmax.f32 %v270_v48, 0.0 }
 0x126   :  { %v233_v59 = vadd.f32 %v390_v16, %v232_v57  ;;  %v265_v60 = vadd.f32 %v390_v16, %v264_v58  ;;  %v280_v1 = vmax.f32 %v230_v51, 0.0  ;;  %v288_v2 = vmax.f32 %v262_v52, 0.0 }
 0x127   :  { %v283_v63 = vmax.f32 %v241_v55, 0.0  ;;  %v291_v0 = vmax.f32 %v273_v56, 0.0 }
 0x128   :  { %v281_v3 = vmax.f32 %v233_v59, 0.0  ;;  %v289_v4 = vmax.f32 %v265_v60, 0.0 }
 0x129   :  { %v457_v5 = vpack.c.bf16 %v283_v63, %v282_v61  ;;  %v477_v6 = vpack.c.bf16 %v291_v0, %v290_v62 }
 0x12a   :  { %v452_v7 = vpack.c.bf16 %v281_v3, %v280_v1  ;;  %v472_v8 = vpack.c.bf16 %v289_v4, %v288_v2 }
 0x12b   :  { %481 = vst [vmem:[#allocation7 + $0x18] sm:$0xff] %v457_v5   ;;  %485 = vst [vmem:[#allocation7 + $0x38] sm:$0xff] %v477_v6  }
 0x12c   :  { %480 = vst [vmem:[#allocation7 + $0x10] sm:$0xff] %v452_v7   ;;  %484 = vst [vmem:[#allocation7 + $0x30] sm:$0xff] %v472_v8  }
 0x12d   :  { %626 = shalt.err (!%p623_p6)
}
 0x12e   :  { %s627_s15 = scalar_lea.hbm %s719_s3, 1024 }
 0x12f   :  { %p628_p7 = scmp.ne.s32.totalorder %s719_s3, %s627_s15  ;;  %p631_p8 = scmp.lt.u32.totalorder %s627_s15, %s719_s3 }
 0x131   :  { %p633_p9 = pnand %p631_p8, %p628_p7 }
 0x133   :  { %636 = shalt.err (!%p633_p9)
}
 0x134   :  { %383 = dma.vmem_to_hbm [thread:$0]  %s378_s11, 1024, %s719_s3, [#allocation4], %s644_s22, %s644_s22, %s645_s23  }
 0x135   :  { %641 = dma.done.wait [#allocation4], 1024  }
 0x136   :  { %642 = vsyncadd [#allocation4], 4294966272 }
 0x137   :  { %387 = vsyncpa [#allocation3], 1 }
 0x138   :  { %388 = vsyncpa [#allocation6], 1 }
 0x139   :  { %389 = vsyncpa [#allocation4], 1 }

</bundles_post_ra>
